<compile_context>
chip_gen: v5e
topology: v5e:2x2
jax: 0.10.0
libtpu: 0.0.40
codegen_flags: <defaults>
</compile_context>

<pallas_src>
import jax
import jax.numpy as jnp
from jax.experimental import pallas as pl
from jax.experimental.pallas import tpu as pltpu


def _round_up(x, m):
    return ((x + m - 1) // m) * m


def _make_fusion_kernel(num_views):
    def kernel(w_ref, *refs):
        # w_ref:  SMEM (V,) float32            -- scalar-prefetched fusion weights
        # refs:   V VMEM (tn, td) view tiles, then the (tn, td) output tile
        emb_refs = refs[:num_views]
        out_ref = refs[num_views]
        acc = w_ref[0] * emb_refs[0][...].astype(jnp.float32)
        for v in range(1, num_views):  # static unrolled loop; single acc chain
            acc = acc + w_ref[v] * emb_refs[v][...].astype(jnp.float32)
        out_ref[...] = acc.astype(out_ref.dtype)

    return kernel


def _vmem_budget_bytes():
    """Return (tile_budget, per_tc_vmem_capacity), generation-aware."""
    try:
        kind = jax.devices()[0].device_kind.lower()
    except Exception:
        kind = ""
    cap = None
    try:
        cap = int(pltpu.get_tpu_info().vmem_capacity_bytes)
    except Exception:
        cap = None

    if "v7" in kind:
        # v7x: 64 MiB per TensorCore; the info query may report per-chip (2 TC),
        # so clamp explicitly to the per-TC scratchpad.
        per_tc = 64 << 20
        if cap is not None:
            per_tc = min(per_tc, cap)
        return int(0.45 * per_tc), per_tc

    per_tc = cap if cap is not None else (128 << 20)
    if per_tc >= (96 << 20):
        # v5e / v6e: 128 MiB per TC — spend more of it on bigger tiles.
        return int(0.55 * per_tc), per_tc
    # Unknown / small-VMEM chip: be conservative.
    return int(0.45 * per_tc), per_tc


def _pick_tiles(num_views, n_rows, d_feat, itemsize, budget):
    """Pick (tile_n, tile_d) so the double-buffered footprint fits `budget`."""
    pack = max(8, 32 // itemsize)  # sublane packing: 8 f32 / 16 bf16 / 32 int8

    # Double-buffered footprint of one pack-row stripe at a given feature width.
    def stripe_bytes(td):
        return 2 * (num_views + 1) * td * itemsize * pack

    # Prefer the full feature dim (contiguous per-view rows, lane-dense stores);
    # only tile D when even a minimal row stripe at full D would blow the budget.
    if stripe_bytes(d_feat) <= budget:
        tile_d = d_feat
    else:
        tile_d = 4096  # large multiple of 128; halve only if it can't fit at all
        while tile_d > 128 and stripe_bytes(tile_d) > budget:
            tile_d //= 2
        tile_d = max(tile_d, 128)

    # Largest row tile (multiple of the packing granule) fitting the budget.
    bytes_per_row = 2 * (num_views + 1) * tile_d * itemsize
    tile_n = max(pack, (budget // bytes_per_row) // pack * pack)
    tile_n = min(tile_n, 2048)

    # Don't let the block overrun the whole array by more than edge padding
    # requires: if the array is smaller than the tile, use the largest granule
    # multiple <= N (edge block picks up the remainder), or full N when tiny.
    if tile_n > n_rows:
        tile_n = (n_rows // pack) * pack if n_rows >= pack else n_rows

    # Keep a handful of total grid steps (megacore split / pipeline feed), but
    # never shrink row tiles below ~512 rows just to manufacture steps.
    target_steps = 4
    d_steps = pl.cdiv(d_feat, tile_d)
    n_steps = pl.cdiv(n_rows, tile_n)
    if d_steps * n_steps < target_steps:
        needed_row_steps = pl.cdiv(target_steps, d_steps)
        shrunk = _round_up(pl.cdiv(n_rows, needed_row_steps), pack)
        if shrunk >= 512:
            tile_n = min(tile_n, shrunk)

    return tile_n, tile_d


def fusion_layer(emb_list, weight):
    """Weighted fusion of views: out[n, d] = sum_v weight[v] * emb_list[v][n, d].

    `emb_list` may be a dict (iterated in key order, like the PyTorch module) or
    a sequence of same-shape (N, D) arrays. `weight` has length num_views.
    """
    if isinstance(emb_list, dict):
        embs = [emb_list[k] for k in emb_list.keys()]
    else:
        embs = list(emb_list)
    num_views = len(embs)
    N, D = embs[0].shape
    dtype = embs[0].dtype
    itemsize = jnp.dtype(dtype).itemsize

    weight = jnp.asarray(weight, dtype=jnp.float32)  # SMEM scalars are 32-bit

    budget, per_tc_cap = _vmem_budget_bytes()
    tile_n, tile_d = _pick_tiles(num_views, N, D, itemsize, budget)

    grid = (pl.cdiv(N, tile_n), pl.cdiv(D, tile_d))

    # Double-buffered inputs + output; accumulation lives in vregs (no scratch).
    footprint = 2 * (num_views + 1) * tile_n * tile_d * itemsize
    vmem_limit = min(int(0.9 * per_tc_cap), max(32 << 20, footprint + (4 << 20)))

    view_spec = pl.BlockSpec((tile_n, tile_d), lambda i, j, w: (i, j))

    out = pl.pallas_call(
        _make_fusion_kernel(num_views),
        out_shape=jax.ShapeDtypeStruct((N, D), dtype),
        grid_spec=pltpu.PrefetchScalarGridSpec(
            num_scalar_prefetch=1,               # weights -> SMEM
            grid=grid,
            in_specs=[view_spec] * num_views,    # one contiguous DMA per view
            out_specs=pl.BlockSpec((tile_n, tile_d), lambda i, j, w: (i, j)),
        ),
        compiler_params=pltpu.CompilerParams(
            dimension_semantics=("parallel", "parallel"),
            vmem_limit_bytes=vmem_limit,
        ),
    )(weight, *embs)
    return out


if __name__ == "__main__":
    key = jax.random.PRNGKey(0)

    num_views = 3
    N, D = 300, 128  # small; N deliberately NOT a tile multiple to exercise edge blocks

    # Deterministic example inputs: a dict of per-view embeddings (like emb_list).
    keys = jax.random.split(key, num_views)
    emb_list = {
        f"view_{v}": jax.random.normal(keys[v], (N, D), dtype=jnp.float32)
        for v in range(num_views)
    }

    # Parameter init per the module's __init__: ones(num_views) / num_views.
    weight = jnp.ones((num_views,), dtype=jnp.float32) / num_views

    out = fusion_layer(emb_list, weight)
    out = jax.block_until_ready(out)

    # Reference check against the pure-JAX weighted sum (module semantics).
    ref = sum(w * emb_list[k] for w, k in zip(weight, emb_list.keys()))
    assert out.shape == (N, D)
    assert jnp.allclose(out, ref, atol=1e-5, rtol=1e-5)

    print("KERNEL_OK")
</pallas_src>

<mosaic_0001>
module attributes {stable_mosaic.version = 11 : i64} {
  func.func @kernel(%arg0: i32, %arg1: i32, %arg2: memref<3xf32, #tpu.memory_space<smem>>, %arg3: memref<296x128xf32, #tpu.memory_space<vmem>>, %arg4: memref<296x128xf32, #tpu.memory_space<vmem>>, %arg5: memref<296x128xf32, #tpu.memory_space<vmem>>, %arg6: memref<296x128xf32, #tpu.memory_space<vmem>>) attributes {dimension_semantics = [#tpu.dimension_semantics<parallel>, #tpu.dimension_semantics<parallel>], iteration_bounds = array<i64: 2, 1>, scalar_prefetch = 1 : i64, scratch_operands = 0 : i64, tpu.core_type = #tpu.core_type<tc>, window_params = [{transform_indices = @transform_0, window_bounds = array<i64: 296, 128>}, {transform_indices = @transform_1, window_bounds = array<i64: 296, 128>}, {transform_indices = @transform_2, window_bounds = array<i64: 296, 128>}, {transform_indices = @transform_3, window_bounds = array<i64: 296, 128>}]} {
    %c0 = arith.constant 0 : index
    %0 = memref.load %arg2[%c0] : memref<3xf32, #tpu.memory_space<smem>>
    %c0_0 = arith.constant 0 : index
    %c0_1 = arith.constant 0 : index
    %1 = vector.load %arg3[%c0_0, %c0_1] : memref<296x128xf32, #tpu.memory_space<vmem>>, vector<296x128xf32>
    %2 = vector.broadcast %0 : f32 to vector<296x128xf32>
    %3 = arith.mulf %2, %1 : vector<296x128xf32>
    %c1 = arith.constant 1 : index
    %4 = memref.load %arg2[%c1] : memref<3xf32, #tpu.memory_space<smem>>
    %c0_2 = arith.constant 0 : index
    %c0_3 = arith.constant 0 : index
    %5 = vector.load %arg4[%c0_2, %c0_3] : memref<296x128xf32, #tpu.memory_space<vmem>>, vector<296x128xf32>
    %6 = vector.broadcast %4 : f32 to vector<296x128xf32>
    %7 = arith.mulf %6, %5 : vector<296x128xf32>
    %8 = arith.addf %3, %7 : vector<296x128xf32>
    %c2 = arith.constant 2 : index
    %9 = memref.load %arg2[%c2] : memref<3xf32, #tpu.memory_space<smem>>
    %c0_4 = arith.constant 0 : index
    %c0_5 = arith.constant 0 : index
    %10 = vector.load %arg5[%c0_4, %c0_5] : memref<296x128xf32, #tpu.memory_space<vmem>>, vector<296x128xf32>
    %11 = vector.broadcast %9 : f32 to vector<296x128xf32>
    %12 = arith.mulf %11, %10 : vector<296x128xf32>
    %13 = arith.addf %8, %12 : vector<296x128xf32>
    %c0_6 = arith.constant 0 : index
    %c0_7 = arith.constant 0 : index
    %14 = vector.load %arg6[%c0_6, %c0_7] : memref<296x128xf32, #tpu.memory_space<vmem>>, vector<296x128xf32>
    tpu.vector_store %arg6[%c0_6, %c0_7], %13 {strides = array<i32>} : memref<296x128xf32, #tpu.memory_space<vmem>>, vector<296x128xf32>,
    return
  }
  func.func @transform_0(%arg0: i32, %arg1: i32, %arg2: memref<3xf32, #tpu.memory_space<smem>>) -> (i32, i32) {
    %c0_i32 = arith.constant 0 : i32
    return %arg0, %arg1 : i32, i32
  }
  func.func @transform_1(%arg0: i32, %arg1: i32, %arg2: memref<3xf32, #tpu.memory_space<smem>>) -> (i32, i32) {
    %c0_i32 = arith.constant 0 : i32
    return %arg0, %arg1 : i32, i32
  }
  func.func @transform_2(%arg0: i32, %arg1: i32, %arg2: memref<3xf32, #tpu.memory_space<smem>>) -> (i32, i32) {
    %c0_i32 = arith.constant 0 : i32
    return %arg0, %arg1 : i32, i32
  }
  func.func @transform_3(%arg0: i32, %arg1: i32, %arg2: memref<3xf32, #tpu.memory_space<smem>>) -> (i32, i32) {
    %c0_i32 = arith.constant 0 : i32
    return %arg0, %arg1 : i32, i32
  }
}

</mosaic_0001>

<bundles_post_ra>
// kernel: tpu_custom_call.1
= control target key start
LH: loop header
LB: loop body
LE: loop exit
PB: predicated region body
PF: predicated region fallthrough
CT: control target
= control target key end

     0   :  { %s1173_s18 = smov [#allocation3]   ;;  %s1780_s0 = inlined_call_operand.hbm [shape: f32[3], index: 0, kind: input, shape index: {}]   ;;  %s1781_s1 = inlined_call_operand.hbm [shape: f32[300,128], index: 1, kind: input, shape index: {}]   ;;  %s1782_s2 = inlined_call_operand.hbm [shape: f32[300,128], index: 2, kind: input, shape index: {}]   ;;  %s1783_s3 = inlined_call_operand.hbm [shape: f32[300,128], index: 3, kind: input, shape index: {}]   ;;  %s1784_s4 = inlined_call_operand.hbm [shape: f32[300,128], index: 4, kind: output, shape index: {}]  }
   0x1   :  { %s10_s17 = sshll.u32 %s1780_s0, 4  ;;  %s11_s17 = int_to_ptr.hbm [resolvable:$true] %s10_s17 }
   0x2   :  { %13 = dma.hbm_to_smem %s11_s17, 16, %s1173_s18, [#allocation2] }
   0x3   :  { %1135 = dma.done.wait [#allocation2], 16 }
   0x4   :  { %1136 = vsyncadd [#allocation2], 4294967280 }
   0x5   :  { %16 = sfence }
   0x6   :  { %17 = vsyncpa [#allocation5], 0 }
   0x7   :  { %19 = vsyncpa [#allocation5 + $0x1], 0 }
   0x8   :  { %20 = vsyncpa [#allocation8], 0 }
   0x9   :  { %22 = vsyncpa [#allocation8 + $0x1], 0 }
   0xa   :  { %23 = vsyncpa [#allocation6], 0 }
   0xb   :  { %25 = vsyncpa [#allocation6 + $0x1], 0  ;;  %s1214_s19 = smov 0   ;;  %s1216_s20 = smov 0  }
   0xc   :  { %s1218_s21 = smov 0   ;;  %s1220_s22 = smov 0  }
   0xd   :  { %s1222_s0 = smov 0   ;;  %s1224_s23 = smov 0  }
   0xe LB: > { %s1245_s24 = sadd.s32 4294967295, %s1171_s23   ;;  %s841_s25 = sadd.s32 4294967294, %s1171_s23   ;;  %s1171_s23 = sphi %s1224_s23, %s31_s23   ;;  %s1167_s0 = sphi %s1222_s0, %s1802_s0   ;;  %s1163_s22 = sphi %s1220_s22, %s1801_s22   ;;  %s1159_s21 = sphi %s1218_s21, %s1800_s21   ;;  %s1155_s20 = sphi %s1216_s20, %s1799_s20   ;;  %s1151_s19 = sphi %s1214_s19, %s1798_s19  }
   0xf   : > { %s43_s26 = sadd.s32 1, %s1167_s0  ;;  %s52_s27 = sadd.s32 1, %s1159_s21 }
  0x10   : > { %p45_p0 = scmp.ge.s32.totalorder %s43_s26, 2  ;;  %p59_p1 = scmp.ne.s32.totalorder %s1159_s21, %s1155_s20 }
  0x11   : > { %p60_p2 = scmp.eq.s32.totalorder %s1171_s23, 0  ;;  %p65_p3 = scmp.ne.s32.totalorder %s1155_s20, %s1151_s19 }
  0x12   : > { %s1804_s26 = smov (%p45_p0, %s43_s26), 0  ;;  %p66_p5 = scmp.eq.s32.totalorder %s1245_s24, 0 }
  0x13   : > { %1786 = sst [smem:[#allocation15_spill]] %s1804_s26  ;;  %p1257_p4 = por %p60_p2, %p59_p1 }
  0x14   : > { %s47_s29 = ssub.s32 %s1167_s0, %s1804_s26  ;;  %p147_p6 = scmp.eq.s32.totalorder %s1245_s24, 1 }
  0x15   : > { %p50_p7 = scmp.eq.s32.totalorder %s47_s29, 0  ;;  %p1265_p8 = por %p66_p5, %p65_p3 }
  0x16   : > { %p1269_p9 = por %p147_p6, %p59_p1  ;;  %p153_p10 = scmp.eq.s32.totalorder %s841_s25, 1 }
  0x17   : > { %s1274_s6 = scalar_select %p50_p7, %s1159_s21, %s52_s27  }
  0x18   : > { %p1276_p11 = por %p153_p10, %p65_p3  ;;  %p843_p12 = scmp.ge.s32.totalorder %s1171_s23, 2 }
  0x19   : > { %1790 = sst [smem:[#allocation16_spill]] %s1274_s6 }
  0x1a   : > { %169 = sbr.rel (%p843_p12) target bundleno = 145 (0x91), region = 16 }
  0x1f   : > { %172 = sbr.rel (!%p1257_p4) target bundleno = 69 (0x45), region = 20  ;;  %s173_s8 = sand.u32 (%p1257_p4), 1, %s1159_s21  }
  0x20   : > { %s178_s9 = smul.u32 (%p1257_p4), 37, %s1167_s0  ;;  %s1290_s15 = scalar_lea.sflag (%p1257_p4), [#allocation5], %s173_s8 }
  0x21   : > { %s873_s10 = smul.u32 (%p1257_p4), 296, %s173_s8 }
  0x22   : > { %s179_s11 = ssub.s32 (%p1257_p4), 38, %s178_s9 }
  0x23   : > { %p180_p13 = scmp.lt.s32.totalorder (%p1257_p4), %s179_s11, 37  ;;  %s177_s16 = scalar_lea.vmem (%p1257_p4), [#allocation4], %s873_s10 }
  0x25   : > { %s1806_s11 = smov (!%p180_p13, %s179_s11), 37 }
  0x26   : > { %s844_s12 = sshll.u32 %s1806_s11, 3 }
  0x27   : > { %s183_s13 = ssub.s32 296, %s844_s12 }
  0x28   : > { %s184_s14 = sshll.u32 %s183_s13, 4 }
  0x29   : > { %185 = vsyncadd %s1290_s15, %s184_s14  ;;  %p1293_p0 = scmp.ne.s32.totalorder %s844_s12, 0  ;;  %s869_s18 = smul.u32 296, %s1167_s0 }
  0x2a   : > { %s1298_s25 = sshll.u32 %s177_s16, 4  ;;  %s848_s27 = sshll.u32 %s1806_s11, 7  ;;  %s194_s25 = int_to_ptr.vmem [resolvable:$true] %s1298_s25 }
  0x2b   : > { %s189_s8 = scalar_lea.hbm %s1781_s1, %s869_s18  ;;  %s957_s12 = sshrl.u32 %s848_s27, 4 }
  0x2c   : > { %s191_s10 = sshll.u32 %s189_s8, 4  ;;  %s966_s6 = scalar_lea.hbm %s1781_s1, 304  ;;  %s1305_s10 = int_to_ptr.hbm [resolvable:$true] %s191_s10 }
  0x2d   : > { %s955_s13 = sshra.s32 %s1305_s10, 4  ;;  %s956_s13 = int_to_ptr.hbm [resolvable:$true] %s955_s13 }
  0x2e   : > { %s962_s14 = scalar_lea.hbm %s956_s13, %s957_s12 }
  0x2f   : > { %p963_p1 = scmp.ne.s32.totalorder %s956_s13, %s962_s14  ;;  %p968_p5 = scmp.lt.s32.totalorder %s966_s6, %s962_s14 }
  0x31   : > { %p964_p2 = pnand %p963_p1, %p1293_p0 }
  0x33   : > { %p965_p3 = pneg %p964_p2 }
  0x35   : > { %p970_p6 = pnand %p968_p5, %p965_p3 }
  0x37   : > { %973 = shalt.err (!%p970_p6)
}
  0x38   : > { %s974_s18 = sshra.s32 %s194_s25, 4  ;;  %s1174_s9 = smov [#allocation4]   ;;  %s975_s18 = int_to_ptr.vmem [resolvable:$true] %s974_s18 }
  0x39   : > { %s981_s29 = scalar_lea.vmem %s975_s18, %s957_s12  ;;  %s985_s8 = scalar_lea.vmem %s1174_s9, 592 }
  0x3a   : > { %p982_p7 = scmp.ne.s32.totalorder %s975_s18, %s981_s29  ;;  %p987_p1 = scmp.lt.s32.totalorder %s985_s8, %s981_s29 }
  0x3c   : > { %p983_p10 = pnand %p982_p7, %p1293_p0 }
  0x3e   : > { %p984_p13 = pneg %p983_p10 }
  0x40   : > { %p989_p2 = pnand %p987_p1, %p984_p13 }
  0x42   : > { %992 = shalt.err (!%p989_p2)
}
  0x43   : > { %s1175_s26 = smov 128   ;;  %s1176_s6 = smov 8  }
  0x44   : > { %199 = dma.hbm_to_vmem [thread:$0]  (%p1293_p0), %s1305_s10, %s848_s27, %s194_s25, %s1290_s15, %s1175_s26, %s1175_s26, %s1176_s6  }
  0x45 PF: > { %202 = sbr.rel (!%p1257_p4) target bundleno = 107 (0x6b), region = 24  ;;  %s203_s13 = sand.u32 (%p1257_p4), 1, %s1171_s23  }
  0x46   : > { %s205_s12 = sand.u32 (%p1257_p4), 1, %s1159_s21   ;;  %s208_s16 = smul.u32 (%p1257_p4), 37, %s1167_s0 }
  0x47   : > { %s874_s14 = smul.u32 (%p1257_p4), 296, %s205_s12  ;;  %s1335_s15 = scalar_lea.sflag (%p1257_p4), [#allocation8], %s203_s13 }
  0x48   : > { %s209_s18 = ssub.s32 (%p1257_p4), 38, %s208_s16 }
  0x49   : > { %p210_p3 = scmp.lt.s32.totalorder (%p1257_p4), %s209_s18, 37  ;;  %s207_s25 = scalar_lea.vmem (%p1257_p4), [#allocation7], %s874_s14 }
  0x4b   : > { %s1808_s18 = smov (!%p210_p3, %s209_s18), 37 }
  0x4c   : > { %s849_s17 = sshll.u32 %s1808_s18, 3 }
  0x4d   : > { %s213_s29 = ssub.s32 296, %s849_s17 }
  0x4e   : > { %s214_s11 = sshll.u32 %s213_s29, 4 }
  0x4f   : > { %215 = vsyncadd %s1335_s15, %s214_s11  ;;  %p1338_p0 = scmp.ne.s32.totalorder %s849_s17, 0  ;;  %s870_s10 = smul.u32 296, %s1167_s0 }
  0x50   : > { %s1343_s9 = sshll.u32 %s207_s25, 4  ;;  %s853_s8 = sshll.u32 %s1808_s18, 7  ;;  %s224_s9 = int_to_ptr.vmem [resolvable:$true] %s1343_s9 }
  0x51   : > { %s219_s13 = scalar_lea.hbm %s1782_s2, %s870_s10  ;;  %s996_s16 = sshrl.u32 %s853_s8, 4 }
  0x52   : > { %s221_s12 = sshll.u32 %s219_s13, 4  ;;  %s1005_s25 = scalar_lea.hbm %s1782_s2, 304  ;;  %s1350_s12 = int_to_ptr.hbm [resolvable:$true] %s221_s12 }
  0x53   : > { %s994_s14 = sshra.s32 %s1350_s12, 4  ;;  %s995_s14 = int_to_ptr.hbm [resolvable:$true] %s994_s14 }
  0x54   : > { %s1001_s17 = scalar_lea.hbm %s995_s14, %s996_s16 }
  0x55   : > { %p1002_p5 = scmp.ne.s32.totalorder %s995_s14, %s1001_s17  ;;  %p1007_p10 = scmp.lt.s32.totalorder %s1005_s25, %s1001_s17 }
  0x57   : > { %p1003_p6 = pnand %p1002_p5, %p1338_p0 }
  0x59   : > { %p1004_p7 = pneg %p1003_p6 }
  0x5b   : > { %p1009_p13 = pnand %p1007_p10, %p1004_p7 }
  0x5d   : > { %1012 = shalt.err (!%p1009_p13)
}
  0x5e   : > { %s1013_s10 = sshra.s32 %s224_s9, 4  ;;  %s1177_s6 = smov [#allocation7]   ;;  %s1014_s10 = int_to_ptr.vmem [resolvable:$true] %s1013_s10 }
  0x5f   : > { %s1020_s26 = scalar_lea.vmem %s1014_s10, %s996_s16  ;;  %s1024_s13 = scalar_lea.vmem %s1177_s6, 592 }
  0x60   : > { %p1021_p1 = scmp.ne.s32.totalorder %s1014_s10, %s1020_s26  ;;  %p1026_p5 = scmp.lt.s32.totalorder %s1024_s13, %s1020_s26 }
  0x62   : > { %p1022_p2 = pnand %p1021_p1, %p1338_p0 }
  0x64   : > { %p1023_p3 = pneg %p1022_p2 }
  0x66   : > { %p1028_p6 = pnand %p1026_p5, %p1023_p3 }
  0x68   : > { %1031 = shalt.err (!%p1028_p6)
}
  0x69   : > { %s1178_s14 = smov 128   ;;  %s1179_s17 = smov 8  }
  0x6a   : > { %229 = dma.hbm_to_vmem [thread:$0]  (%p1338_p0), %s1350_s12, %s853_s8, %s224_s9, %s1335_s15, %s1178_s14, %s1178_s14, %s1179_s17  }
  0x6b PF: > { %232 = sbr.rel (!%p1257_p4) target bundleno = 145 (0x91), region = 28  ;;  %s233_s16 = sand.u32 (%p1257_p4), 1, %s1171_s23  }
  0x6c   : > { %s235_s29 = sand.u32 (%p1257_p4), 1, %s1159_s21   ;;  %s238_s25 = smul.u32 (%p1257_p4), 37, %s1167_s0 }
  0x6d   : > { %s875_s11 = smul.u32 (%p1257_p4), 296, %s235_s29  ;;  %s1380_s15 = scalar_lea.sflag (%p1257_p4), [#allocation8], %s233_s16 }
  0x6e   : > { %s239_s10 = ssub.s32 (%p1257_p4), 38, %s238_s25 }
  0x6f   : > { %p240_p7 = scmp.lt.s32.totalorder (%p1257_p4), %s239_s10, 37  ;;  %s237_s28 = scalar_lea.vmem (%p1257_p4), [#allocation9], %s875_s11 }
  0x71   : > { %s1810_s10 = smov (!%p240_p7, %s239_s10), 37 }
  0x72   : > { %s854_s27 = sshll.u32 %s1810_s10, 3 }
  0x73   : > { %s243_s26 = ssub.s32 296, %s854_s27 }
  0x74   : > { %s244_s18 = sshll.u32 %s243_s26, 4 }
  0x75   : > { %245 = vsyncadd %s1380_s15, %s244_s18  ;;  %p1383_p4 = scmp.ne.s32.totalorder %s854_s27, 0  ;;  %s871_s8 = smul.u32 296, %s1167_s0 }
  0x76   : > { %s1388_s12 = sshll.u32 %s237_s28, 4  ;;  %s858_s6 = sshll.u32 %s1810_s10, 7  ;;  %s254_s12 = int_to_ptr.vmem [resolvable:$true] %s1388_s12 }
  0x77   : > { %s249_s17 = scalar_lea.hbm %s1783_s3, %s871_s8  ;;  %s1035_s11 = sshrl.u32 %s858_s6, 4 }
  0x78   : > { %s251_s16 = sshll.u32 %s249_s17, 4  ;;  %s1044_s18 = scalar_lea.hbm %s1783_s3, 304  ;;  %s1395_s16 = int_to_ptr.hbm [resolvable:$true] %s251_s16 }
  0x79   : > { %s1033_s29 = sshra.s32 %s1395_s16, 4  ;;  %s1034_s29 = int_to_ptr.hbm [resolvable:$true] %s1033_s29 }
  0x7a   : > { %s1040_s25 = scalar_lea.hbm %s1034_s29, %s1035_s11 }
  0x7b   : > { %p1041_p0 = scmp.ne.s32.totalorder %s1034_s29, %s1040_s25  ;;  %p1046_p1 = scmp.lt.s32.totalorder %s1044_s18, %s1040_s25 }
  0x7d   : > { %p1042_p10 = pnand %p1041_p0, %p1383_p4 }
  0x7f   : > { %p1043_p13 = pneg %p1042_p10 }
  0x81   : > { %p1048_p2 = pnand %p1046_p1, %p1043_p13 }
  0x83   : > { %1051 = shalt.err (!%p1048_p2)
}
  0x84   : > { %s1052_s28 = sshra.s32 %s254_s12, 4  ;;  %s1180_s13 = smov [#allocation9]   ;;  %s1053_s28 = int_to_ptr.vmem [resolvable:$true] %s1052_s28 }
  0x85   : > { %s1059_s8 = scalar_lea.vmem %s1053_s28, %s1035_s11  ;;  %s1063_s14 = scalar_lea.vmem %s1180_s13, 592 }
  0x86   : > { %p1060_p3 = scmp.ne.s32.totalorder %s1053_s28, %s1059_s8  ;;  %p1065_p7 = scmp.lt.s32.totalorder %s1063_s14, %s1059_s8 }
  0x88   : > { %p1061_p5 = pnand %p1060_p3, %p1383_p4 }
  0x8a   : > { %p1062_p6 = pneg %p1061_p5 }
  0x8c   : > { %p1067_p0 = pnand %p1065_p7, %p1062_p6 }
  0x8e   : > { %1070 = shalt.err (!%p1067_p0)
}
  0x8f   : > { %s1181_s17 = smov 128   ;;  %s1182_s29 = smov 8  }
  0x90   : > { %259 = dma.hbm_to_vmem [thread:$0]  (%p1383_p4), %s1395_s16, %s858_s6, %s254_s12, %s1380_s15, %s1181_s17, %s1181_s17, %s1182_s29  }
  0x91 PF: > { %p859_p10 = scmp.ge.s32.totalorder %s1171_s23, 1  ;;  %p261_p13 = scmp.lt.s32.totalorder %s1171_s23, 3 }
  0x93   : > { %p262_p1 = pnand %p859_p10, %p261_p13 }
  0x94   : > { %s1420_s11 = sand.u32 (!%p262_p1), 1, %s1155_s20  }
  0x95   : > { %265 = sbr.rel (%p262_p1) target bundleno = 247 (0xf7), region = 32  ;;  %s268_s9 = scalar_lea.sflag (!%p262_p1), [#allocation5], %s1420_s11 }
  0x96   : > { %s1423_s25 = smul.u32 (!%p262_p1), 296, %s1420_s11 }
  0x98   : > { %s1427_s10 = scalar_lea.vmem (!%p262_p1), [#allocation4], %s1423_s25 }
  0x9a   : > { %1138 = dma.done.wait (%p1265_p8), %s268_s9, 4736  }
  0x9b   : > { %1140 = vsyncadd (%p1265_p8), %s268_s9, 4294962560  ;;  %s277_s15 = sand.u32 1, %s1245_s24   ;;  %s1435_s6 = scalar_lea.vmem [#allocation7], %s1423_s25 }
  0x9c   : > { %s278_s12 = scalar_lea.sflag [#allocation8], %s277_s15 }
  0x9d   : > { %1142 = dma.done.wait (%p1265_p8), %s278_s12, 9472  }
  0x9e   : > { %1144 = vsyncadd (%p1265_p8), %s278_s12, 4294957824  ;;  %s345_s16 = sld [smem:[#allocation3]]  ;;  %v346_v0 = vld [vmem:[%s1427_s10] sm:$0xff]  ;;  %v422_v2 = vld [vmem:[%s1435_s6] sm:$0xff]  ;;  %s1446_s24 = scalar_lea.vmem [#allocation9], %s1423_s25 }
  0x9f   : > { %s860_s27 = sld [smem:[#allocation3 + $0x1]]  ;;  %v535_v3 = vld [vmem:[%s1446_s24] sm:$0xff]  ;;  %v347_v6 = vld [vmem:[%s1427_s10 + $0x8] sm:$0xff]  ;;  %v423_v7 = vld [vmem:[%s1435_s6 + $0x8] sm:$0xff]  ;;  %s1492_s30 = scalar_lea.vmem [#allocation10], %s1423_s25 }
  0xa0   : > { %s861_s26 = sld [smem:[#allocation3 + $0x2]]  ;;  %v536_v8 = vld [vmem:[%s1446_s24 + $0x8] sm:$0xff]  ;;  %v348_v13 = vld [vmem:[%s1427_s10 + $0x10] sm:$0xff]  ;;  %v424_v14 = vld [vmem:[%s1435_s6 + $0x10] sm:$0xff]  ;;  %s685_s18 = scalar_lea.sflag [#allocation6], %s1420_s11 }
  0xa1   : > { %v537_v15 = vld [vmem:[%s1446_s24 + $0x10] sm:$0xff]  ;;  %v349_v20 = vld [vmem:[%s1427_s10 + $0x18] sm:$0xff]  ;;  %v425_v21 = vld [vmem:[%s1435_s6 + $0x18] sm:$0xff]  ;;  %s692_s28 = smul.u32 (%p1269_p9), 37, %s1163_s22 }
  0xa2   : > { %v538_v22 = vld [vmem:[%s1446_s24 + $0x18] sm:$0xff]  ;;  %v350_v27 = vld [vmem:[%s1427_s10 + $0x20] sm:$0xff]  ;;  %v426_v28 = vld [vmem:[%s1435_s6 + $0x20] sm:$0xff] }
  0xa3   : > { %v539_v29 = vld [vmem:[%s1446_s24 + $0x20] sm:$0xff]  ;;  %v351_v34 = vld [vmem:[%s1427_s10 + $0x28] sm:$0xff]  ;;  %v427_v35 = vld [vmem:[%s1435_s6 + $0x28] sm:$0xff]  ;;  %s693_s8 = ssub.s32 (%p1269_p9), 38, %s692_s28 }
  0xa4   : > { %v1442_v1 = vstv %s345_s16  ;;  %v540_v36 = vld [vmem:[%s1446_s24 + $0x28] sm:$0xff]  ;;  %v352_v41 = vld [vmem:[%s1427_s10 + $0x30] sm:$0xff]  ;;  %v428_v42 = vld [vmem:[%s1435_s6 + $0x30] sm:$0xff]  ;;  %p694_p8 = scmp.lt.s32.totalorder (%p1269_p9), %s693_s8, 37 }
  0xa5   : > { %v384_v4 = vmul.f32 %v1442_v1, %v346_v0  ;;  %v1450_v5 = vstv %s860_s27  ;;  %v385_v11 = vmul.f32 %v1442_v1, %v347_v6  ;;  %v386_v18 = vmul.f32 %v1442_v1, %v348_v13  ;;  %v541_v43 = vld [vmem:[%s1446_s24 + $0x30] sm:$0xff]  ;;  %v353_v48 = vld [vmem:[%s1427_s10 + $0x38] sm:$0xff]  ;;  %v429_v49 = vld [vmem:[%s1435_s6 + $0x38] sm:$0xff] }
  0xa6   : > { %v460_v9 = vmul.f32 %v1450_v5, %v422_v2  ;;  %v1456_v10 = vstv %s861_s26  ;;  %v461_v12 = vmul.f32 %v1450_v5, %v423_v7  ;;  %v462_v19 = vmul.f32 %v1450_v5, %v424_v14  ;;  %v542_v50 = vld [vmem:[%s1446_s24 + $0x38] sm:$0xff]  ;;  %v354_v55 = vld [vmem:[%s1427_s10 + $0x40] sm:$0xff]  ;;  %v430_v56 = vld [vmem:[%s1435_s6 + $0x40] sm:$0xff] }
  0xa7   : > { %v573_v16 = vmul.f32 %v1456_v10, %v535_v3  ;;  %v574_v17 = vmul.f32 %v1456_v10, %v536_v8  ;;  %v575_v25 = vmul.f32 %v1456_v10, %v537_v15  ;;  %v387_v26 = vmul.f32 %v1442_v1, %v349_v20  ;;  %v543_v57 = vld [vmem:[%s1446_s24 + $0x40] sm:$0xff]  ;;  %v355_v62 = vld [vmem:[%s1427_s10 + $0x48] sm:$0xff]  ;;  %v431_v63 = vld [vmem:[%s1435_s6 + $0x48] sm:$0xff] }
  0xa8   : > { %v497_v23 = vadd.f32 %v460_v9, %v384_v4  ;;  %v498_v24 = vadd.f32 %v461_v12, %v385_v11  ;;  %v499_v30 = vadd.f32 %v462_v19, %v386_v18  ;;  %v463_v31 = vmul.f32 %v1450_v5, %v425_v21  ;;  %v544_v6 = vld [vmem:[%s1446_s24 + $0x48] sm:$0xff]  ;;  %v356_v7 = vld [vmem:[%s1427_s10 + $0x50] sm:$0xff]  ;;  %v432_v8 = vld [vmem:[%s1435_s6 + $0x50] sm:$0xff] }
  0xa9   : > { %v576_v32 = vmul.f32 %v1456_v10, %v538_v22  ;;  %v388_v33 = vmul.f32 %v1442_v1, %v350_v27  ;;  %v464_v39 = vmul.f32 %v1450_v5, %v426_v28  ;;  %v577_v40 = vmul.f32 %v1456_v10, %v539_v29  ;;  %v545_v14 = vld [vmem:[%s1446_s24 + $0x50] sm:$0xff]  ;;  %v357_v15 = vld [vmem:[%s1427_s10 + $0x58] sm:$0xff]  ;;  %v433_v20 = vld [vmem:[%s1435_s6 + $0x58] sm:$0xff] }
  0xaa   : > { %v610_v37 = vadd.f32 %v573_v16, %v497_v23  ;;  %v611_v38 = vadd.f32 %v574_v17, %v498_v24  ;;  %v612_v44 = vadd.f32 %v575_v25, %v499_v30  ;;  %v500_v45 = vadd.f32 %v463_v31, %v387_v26  ;;  %v546_v21 = vld [vmem:[%s1446_s24 + $0x58] sm:$0xff]  ;;  %v358_v26 = vld [vmem:[%s1427_s10 + $0x60] sm:$0xff]  ;;  %v434_v27 = vld [vmem:[%s1435_s6 + $0x60] sm:$0xff] }
  0xab   : > { %v389_v46 = vmul.f32 %v1442_v1, %v351_v34  ;;  %v465_v47 = vmul.f32 %v1450_v5, %v427_v35  ;;  %v501_v51 = vadd.f32 %v464_v39, %v388_v33  ;;  %v578_v52 = vmul.f32 %v1456_v10, %v540_v36  ;;  %v547_v28 = vld [vmem:[%s1446_s24 + $0x60] sm:$0xff]  ;;  %v359_v33 = vld [vmem:[%s1427_s10 + $0x68] sm:$0xff]  ;;  %v435_v34 = vld [vmem:[%s1435_s6 + $0x68] sm:$0xff] }
  0xac   : > { %647 = vst [vmem:[%s1492_s30] sm:$0xff] %v610_v37  ;;  %v390_v53 = vmul.f32 %v1442_v1, %v352_v41  ;;  %v466_v54 = vmul.f32 %v1450_v5, %v428_v42  ;;  %v613_v58 = vadd.f32 %v576_v32, %v500_v45  ;;  %v579_v60 = vmul.f32 %v1456_v10, %v541_v43  ;;  %v548_v39 = vld [vmem:[%s1446_s24 + $0x68] sm:$0xff]  ;;  %v436_v41 = vld [vmem:[%s1435_s6 + $0x70] sm:$0xff] }
  0xad   : > { %648 = vst [vmem:[%s1492_s30 + $0x8] sm:$0xff] %v611_v38  ;;  %v502_v59 = vadd.f32 %v465_v47, %v389_v46  ;;  %v391_v61 = vmul.f32 %v1442_v1, %v353_v48  ;;  %v614_v0 = vadd.f32 %v577_v40, %v501_v51  ;;  %v467_v3 = vmul.f32 %v1450_v5, %v429_v49  ;;  %v360_v40 = vld [vmem:[%s1427_s10 + $0x70] sm:$0xff]  ;;  %v361_v47 = vld [vmem:[%s1427_s10 + $0x78] sm:$0xff] }
  0xae   : > { %649 = vst [vmem:[%s1492_s30 + $0x10] sm:$0xff] %v612_v44  ;;  %v503_v2 = vadd.f32 %v466_v54, %v390_v53  ;;  %v580_v4 = vmul.f32 %v1456_v10, %v542_v50  ;;  %v392_v11 = vmul.f32 %v1442_v1, %v354_v55  ;;  %v468_v12 = vmul.f32 %v1450_v5, %v430_v56  ;;  %v549_v46 = vld [vmem:[%s1446_s24 + $0x70] sm:$0xff]  ;;  %v550_v53 = vld [vmem:[%s1446_s24 + $0x78] sm:$0xff] }
  0xaf   : > { %650 = vst [vmem:[%s1492_s30 + $0x18] sm:$0xff] %v613_v58  ;;  %v615_v9 = vadd.f32 %v578_v52, %v502_v59  ;;  %v581_v13 = vmul.f32 %v1456_v10, %v543_v57  ;;  %v504_v17 = vadd.f32 %v467_v3, %v391_v61  ;;  %v393_v18 = vmul.f32 %v1442_v1, %v355_v62  ;;  %v437_v52 = vld [vmem:[%s1435_s6 + $0x78] sm:$0xff]  ;;  %v362_v58 = vld [vmem:[%s1427_s10 + $0x80] sm:$0xff]  ;;  %v438_v59 = vld [vmem:[%s1435_s6 + $0x80] sm:$0xff] }
  0xb0   : > { %651 = vst [vmem:[%s1492_s30 + $0x20] sm:$0xff] %v614_v0  ;;  %v616_v16 = vadd.f32 %v579_v60, %v503_v2  ;;  %v469_v19 = vmul.f32 %v1450_v5, %v431_v63  ;;  %v505_v22 = vadd.f32 %v468_v12, %v392_v11  ;;  %v582_v23 = vmul.f32 %v1456_v10, %v544_v6  ;;  %v551_v60 = vld [vmem:[%s1446_s24 + $0x80] sm:$0xff]  ;;  %v363_v2 = vld [vmem:[%s1427_s10 + $0x88] sm:$0xff]  ;;  %v439_v3 = vld [vmem:[%s1435_s6 + $0x88] sm:$0xff] }
  0xb1   : > { %652 = vst [vmem:[%s1492_s30 + $0x28] sm:$0xff] %v615_v9  ;;  %v394_v24 = vmul.f32 %v1442_v1, %v356_v7  ;;  %v470_v25 = vmul.f32 %v1450_v5, %v432_v8  ;;  %v617_v29 = vadd.f32 %v580_v4, %v504_v17  ;;  %v583_v31 = vmul.f32 %v1456_v10, %v545_v14  ;;  %v552_v9 = vld [vmem:[%s1446_s24 + $0x88] sm:$0xff]  ;;  %v364_v11 = vld [vmem:[%s1427_s10 + $0x90] sm:$0xff]  ;;  %v440_v12 = vld [vmem:[%s1435_s6 + $0x90] sm:$0xff] }
  0xb2   : > { %653 = vst [vmem:[%s1492_s30 + $0x30] sm:$0xff] %v616_v16  ;;  %v506_v30 = vadd.f32 %v469_v19, %v393_v18  ;;  %v395_v32 = vmul.f32 %v1442_v1, %v357_v15  ;;  %v618_v35 = vadd.f32 %v581_v13, %v505_v22  ;;  %v471_v37 = vmul.f32 %v1450_v5, %v433_v20  ;;  %v553_v17 = vld [vmem:[%s1446_s24 + $0x90] sm:$0xff]  ;;  %v365_v18 = vld [vmem:[%s1427_s10 + $0x98] sm:$0xff] }
  0xb3   : > { %v507_v36 = vadd.f32 %v470_v25, %v394_v24  ;;  %v584_v38 = vmul.f32 %v1456_v10, %v546_v21  ;;  %654 = vst [vmem:[%s1492_s30 + $0x38] sm:$0xff] %v617_v29  ;;  %v396_v43 = vmul.f32 %v1442_v1, %v358_v26  ;;  %v472_v44 = vmul.f32 %v1450_v5, %v434_v27  ;;  %v554_v24 = vld [vmem:[%s1446_s24 + $0x98] sm:$0xff]  ;;  %v366_v29 = vld [vmem:[%s1427_s10 + $0xa0] sm:$0xff] }
  0xb4   : > { %v619_v42 = vadd.f32 %v582_v23, %v506_v30  ;;  %v585_v45 = vmul.f32 %v1456_v10, %v547_v28  ;;  %655 = vst [vmem:[%s1492_s30 + $0x40] sm:$0xff] %v618_v35  ;;  %v508_v49 = vadd.f32 %v471_v37, %v395_v32  ;;  %v397_v50 = vmul.f32 %v1442_v1, %v359_v33  ;;  %v441_v23 = vld [vmem:[%s1435_s6 + $0x98] sm:$0xff]  ;;  %v442_v30 = vld [vmem:[%s1435_s6 + $0xa0] sm:$0xff]  ;;  %v443_v37 = vld [vmem:[%s1435_s6 + $0xa8] sm:$0xff] }
  0xb5   : > { %v620_v48 = vadd.f32 %v583_v31, %v507_v36  ;;  %v473_v51 = vmul.f32 %v1450_v5, %v435_v34  ;;  %v509_v54 = vadd.f32 %v472_v44, %v396_v43  ;;  %v586_v55 = vmul.f32 %v1456_v10, %v548_v39  ;;  %v555_v31 = vld [vmem:[%s1446_s24 + $0xa0] sm:$0xff]  ;;  %v367_v36 = vld [vmem:[%s1427_s10 + $0xa8] sm:$0xff]  ;;  %v368_v43 = vld [vmem:[%s1427_s10 + $0xb0] sm:$0xff] }
  0xb6   : > { %656 = vst [vmem:[%s1492_s30 + $0x48] sm:$0xff] %v619_v42  ;;  %v398_v56 = vmul.f32 %v1442_v1, %v360_v40  ;;  %v474_v57 = vmul.f32 %v1450_v5, %v436_v41  ;;  %v621_v61 = vadd.f32 %v584_v38, %v508_v49  ;;  %v587_v63 = vmul.f32 %v1456_v10, %v549_v46  ;;  %v556_v42 = vld [vmem:[%s1446_s24 + $0xa8] sm:$0xff]  ;;  %v444_v44 = vld [vmem:[%s1435_s6 + $0xb0] sm:$0xff]  ;;  %v557_v49 = vld [vmem:[%s1446_s24 + $0xb0] sm:$0xff] }
  0xb7   : > { %657 = vst [vmem:[%s1492_s30 + $0x50] sm:$0xff] %v620_v48  ;;  %v510_v62 = vadd.f32 %v473_v51, %v397_v50  ;;  %v399_v0 = vmul.f32 %v1442_v1, %v361_v47  ;;  %v622_v4 = vadd.f32 %v585_v45, %v509_v54  ;;  %v475_v7 = vmul.f32 %v1450_v5, %v437_v52  ;;  %v369_v50 = vld [vmem:[%s1427_s10 + $0xb8] sm:$0xff] }
  0xb8   : > { %v511_v6 = vadd.f32 %v474_v57, %v398_v56  ;;  %v588_v8 = vmul.f32 %v1456_v10, %v550_v53  ;;  %658 = vst [vmem:[%s1492_s30 + $0x58] sm:$0xff] %v621_v61  ;;  %v400_v14 = vmul.f32 %v1442_v1, %v362_v58  ;;  %v476_v15 = vmul.f32 %v1450_v5, %v438_v59  ;;  %v558_v56 = vld [vmem:[%s1446_s24 + $0xb8] sm:$0xff]  ;;  %v370_v61 = vld [vmem:[%s1427_s10 + $0xc0] sm:$0xff] }
  0xb9   : > { %v623_v13 = vadd.f32 %v586_v55, %v510_v62  ;;  %v589_v16 = vmul.f32 %v1456_v10, %v551_v60  ;;  %659 = vst [vmem:[%s1492_s30 + $0x60] sm:$0xff] %v622_v4  ;;  %v512_v20 = vadd.f32 %v475_v7, %v399_v0  ;;  %v401_v21 = vmul.f32 %v1442_v1, %v363_v2  ;;  %v445_v55 = vld [vmem:[%s1435_s6 + $0xb8] sm:$0xff]  ;;  %v446_v62 = vld [vmem:[%s1435_s6 + $0xc0] sm:$0xff]  ;;  %v447_v7 = vld [vmem:[%s1435_s6 + $0xc8] sm:$0xff] }
  0xba   : > { %v624_v19 = vadd.f32 %v587_v63, %v511_v6  ;;  %v477_v22 = vmul.f32 %v1450_v5, %v439_v3  ;;  %v513_v25 = vadd.f32 %v476_v15, %v400_v14  ;;  %v590_v26 = vmul.f32 %v1456_v10, %v552_v9  ;;  %v559_v63 = vld [vmem:[%s1446_s24 + $0xc0] sm:$0xff]  ;;  %v371_v6 = vld [vmem:[%s1427_s10 + $0xc8] sm:$0xff]  ;;  %v372_v14 = vld [vmem:[%s1427_s10 + $0xd0] sm:$0xff] }
  0xbb   : > { %660 = vst [vmem:[%s1492_s30 + $0x68] sm:$0xff] %v623_v13  ;;  %v402_v27 = vmul.f32 %v1442_v1, %v364_v11  ;;  %v478_v28 = vmul.f32 %v1450_v5, %v440_v12  ;;  %v625_v32 = vadd.f32 %v588_v8, %v512_v20  ;;  %v591_v34 = vmul.f32 %v1456_v10, %v553_v17  ;;  %v560_v13 = vld [vmem:[%s1446_s24 + $0xc8] sm:$0xff]  ;;  %v448_v15 = vld [vmem:[%s1435_s6 + $0xd0] sm:$0xff]  ;;  %v561_v20 = vld [vmem:[%s1446_s24 + $0xd0] sm:$0xff] }
  0xbc   : > { %661 = vst [vmem:[%s1492_s30 + $0x70] sm:$0xff] %v624_v19  ;;  %v514_v33 = vadd.f32 %v477_v22, %v401_v21  ;;  %v403_v35 = vmul.f32 %v1442_v1, %v365_v18  ;;  %v626_v38 = vadd.f32 %v589_v16, %v513_v25  ;;  %v479_v40 = vmul.f32 %v1450_v5, %v441_v23  ;;  %v373_v21 = vld [vmem:[%s1427_s10 + $0xd8] sm:$0xff] }
  0xbd   : > { %v515_v39 = vadd.f32 %v478_v28, %v402_v27  ;;  %v592_v41 = vmul.f32 %v1456_v10, %v554_v24  ;;  %662 = vst [vmem:[%s1492_s30 + $0x78] sm:$0xff] %v625_v32  ;;  %v404_v46 = vmul.f32 %v1442_v1, %v366_v29  ;;  %v480_v47 = vmul.f32 %v1450_v5, %v442_v30  ;;  %v562_v27 = vld [vmem:[%s1446_s24 + $0xd8] sm:$0xff]  ;;  %v374_v32 = vld [vmem:[%s1427_s10 + $0xe0] sm:$0xff] }
  0xbe   : > { %v627_v45 = vadd.f32 %v590_v26, %v514_v33  ;;  %v593_v48 = vmul.f32 %v1456_v10, %v555_v31  ;;  %663 = vst [vmem:[%s1492_s30 + $0x80] sm:$0xff] %v626_v38  ;;  %v516_v52 = vadd.f32 %v479_v40, %v403_v35  ;;  %v405_v53 = vmul.f32 %v1442_v1, %v367_v36  ;;  %v449_v26 = vld [vmem:[%s1435_s6 + $0xd8] sm:$0xff]  ;;  %v450_v33 = vld [vmem:[%s1435_s6 + $0xe0] sm:$0xff]  ;;  %v451_v40 = vld [vmem:[%s1435_s6 + $0xe8] sm:$0xff] }
  0xbf   : > { %v628_v51 = vadd.f32 %v591_v34, %v515_v39  ;;  %v481_v54 = vmul.f32 %v1450_v5, %v443_v37  ;;  %v517_v57 = vadd.f32 %v480_v47, %v404_v46  ;;  %v594_v58 = vmul.f32 %v1456_v10, %v556_v42  ;;  %v563_v34 = vld [vmem:[%s1446_s24 + $0xe0] sm:$0xff]  ;;  %v375_v39 = vld [vmem:[%s1427_s10 + $0xe8] sm:$0xff]  ;;  %v376_v46 = vld [vmem:[%s1427_s10 + $0xf0] sm:$0xff] }
  0xc0   : > { %664 = vst [vmem:[%s1492_s30 + $0x88] sm:$0xff] %v627_v45  ;;  %v406_v59 = vmul.f32 %v1442_v1, %v368_v43  ;;  %v482_v60 = vmul.f32 %v1450_v5, %v444_v44  ;;  %v629_v0 = vadd.f32 %v592_v41, %v516_v52  ;;  %v595_v3 = vmul.f32 %v1456_v10, %v557_v49  ;;  %v564_v45 = vld [vmem:[%s1446_s24 + $0xe8] sm:$0xff]  ;;  %v452_v47 = vld [vmem:[%s1435_s6 + $0xf0] sm:$0xff]  ;;  %v565_v52 = vld [vmem:[%s1446_s24 + $0xf0] sm:$0xff] }
  0xc1   : > { %665 = vst [vmem:[%s1492_s30 + $0x90] sm:$0xff] %v628_v51  ;;  %v518_v2 = vadd.f32 %v481_v54, %v405_v53  ;;  %v407_v4 = vmul.f32 %v1442_v1, %v369_v50  ;;  %v630_v8 = vadd.f32 %v593_v48, %v517_v57  ;;  %v483_v11 = vmul.f32 %v1450_v5, %v445_v55  ;;  %v377_v53 = vld [vmem:[%s1427_s10 + $0xf8] sm:$0xff] }
  0xc2   : > { %v519_v9 = vadd.f32 %v482_v60, %v406_v59  ;;  %v596_v12 = vmul.f32 %v1456_v10, %v558_v56  ;;  %666 = vst [vmem:[%s1492_s30 + $0x98] sm:$0xff] %v629_v0  ;;  %v408_v17 = vmul.f32 %v1442_v1, %v370_v61  ;;  %v484_v18 = vmul.f32 %v1450_v5, %v446_v62  ;;  %v566_v59 = vld [vmem:[%s1446_s24 + $0xf8] sm:$0xff]  ;;  %v378_v0 = vld [vmem:[%s1427_s10 + $0x100] sm:$0xff] }
  0xc3   : > { %v631_v16 = vadd.f32 %v594_v58, %v518_v2  ;;  %v597_v19 = vmul.f32 %v1456_v10, %v559_v63  ;;  %667 = vst [vmem:[%s1492_s30 + $0xa0] sm:$0xff] %v630_v8  ;;  %v520_v23 = vadd.f32 %v483_v11, %v407_v4  ;;  %v409_v24 = vmul.f32 %v1442_v1, %v371_v6  ;;  %v453_v58 = vld [vmem:[%s1435_s6 + $0xf8] sm:$0xff]  ;;  %v454_v2 = vld [vmem:[%s1435_s6 + $0x100] sm:$0xff]  ;;  %v455_v11 = vld [vmem:[%s1435_s6 + $0x108] sm:$0xff] }
  0xc4   : > { %v632_v22 = vadd.f32 %v595_v3, %v519_v9  ;;  %v485_v25 = vmul.f32 %v1450_v5, %v447_v7  ;;  %v521_v28 = vadd.f32 %v484_v18, %v408_v17  ;;  %v598_v29 = vmul.f32 %v1456_v10, %v560_v13  ;;  %v567_v3 = vld [vmem:[%s1446_s24 + $0x100] sm:$0xff]  ;;  %v379_v9 = vld [vmem:[%s1427_s10 + $0x108] sm:$0xff]  ;;  %v380_v17 = vld [vmem:[%s1427_s10 + $0x110] sm:$0xff] }
  0xc5   : > { %668 = vst [vmem:[%s1492_s30 + $0xa8] sm:$0xff] %v631_v16  ;;  %v410_v30 = vmul.f32 %v1442_v1, %v372_v14  ;;  %v486_v31 = vmul.f32 %v1450_v5, %v448_v15  ;;  %v633_v35 = vadd.f32 %v596_v12, %v520_v23  ;;  %v599_v37 = vmul.f32 %v1456_v10, %v561_v20  ;;  %v568_v16 = vld [vmem:[%s1446_s24 + $0x108] sm:$0xff]  ;;  %v456_v18 = vld [vmem:[%s1435_s6 + $0x110] sm:$0xff]  ;;  %v569_v23 = vld [vmem:[%s1446_s24 + $0x110] sm:$0xff] }
  0xc6   : > { %669 = vst [vmem:[%s1492_s30 + $0xb0] sm:$0xff] %v632_v22  ;;  %v522_v36 = vadd.f32 %v485_v25, %v409_v24  ;;  %v411_v38 = vmul.f32 %v1442_v1, %v373_v21  ;;  %v634_v41 = vadd.f32 %v597_v19, %v521_v28  ;;  %v487_v43 = vmul.f32 %v1450_v5, %v449_v26  ;;  %v381_v24 = vld [vmem:[%s1427_s10 + $0x118] sm:$0xff] }
  0xc7   : > { %v523_v42 = vadd.f32 %v486_v31, %v410_v30  ;;  %v600_v44 = vmul.f32 %v1456_v10, %v562_v27  ;;  %670 = vst [vmem:[%s1492_s30 + $0xb8] sm:$0xff] %v633_v35  ;;  %v412_v49 = vmul.f32 %v1442_v1, %v374_v32  ;;  %v488_v50 = vmul.f32 %v1450_v5, %v450_v33  ;;  %v570_v30 = vld [vmem:[%s1446_s24 + $0x118] sm:$0xff]  ;;  %v382_v35 = vld [vmem:[%s1427_s10 + $0x120] sm:$0xff] }
  0xc8   : > { %v635_v48 = vadd.f32 %v598_v29, %v522_v36  ;;  %v601_v51 = vmul.f32 %v1456_v10, %v563_v34  ;;  %671 = vst [vmem:[%s1492_s30 + $0xc0] sm:$0xff] %v634_v41  ;;  %v524_v55 = vadd.f32 %v487_v43, %v411_v38  ;;  %v413_v56 = vmul.f32 %v1442_v1, %v375_v39  ;;  %v457_v29 = vld [vmem:[%s1435_s6 + $0x118] sm:$0xff]  ;;  %v458_v36 = vld [vmem:[%s1435_s6 + $0x120] sm:$0xff] }
  0xc9   : > { %v636_v54 = vadd.f32 %v599_v37, %v523_v42  ;;  %v489_v57 = vmul.f32 %v1450_v5, %v451_v40  ;;  %v525_v60 = vadd.f32 %v488_v50, %v412_v49  ;;  %v602_v61 = vmul.f32 %v1456_v10, %v564_v45  ;;  %v571_v37 = vld [vmem:[%s1446_s24 + $0x120] sm:$0xff] }
  0xca   : > { %672 = vst [vmem:[%s1492_s30 + $0xc8] sm:$0xff] %v635_v48  ;;  %v414_v62 = vmul.f32 %v1442_v1, %v376_v46  ;;  %v490_v63 = vmul.f32 %v1450_v5, %v452_v47  ;;  %v637_v4 = vadd.f32 %v600_v44, %v524_v55  ;;  %v603_v7 = vmul.f32 %v1456_v10, %v565_v52 }
  0xcb   : > { %673 = vst [vmem:[%s1492_s30 + $0xd0] sm:$0xff] %v636_v54  ;;  %v526_v6 = vadd.f32 %v489_v57, %v413_v56  ;;  %v415_v8 = vmul.f32 %v1442_v1, %v377_v53  ;;  %v638_v12 = vadd.f32 %v601_v51, %v525_v60  ;;  %v491_v14 = vmul.f32 %v1450_v5, %v453_v58 }
  0xcc   : > { %v527_v13 = vadd.f32 %v490_v63, %v414_v62  ;;  %v604_v15 = vmul.f32 %v1456_v10, %v566_v59  ;;  %674 = vst [vmem:[%s1492_s30 + $0xd8] sm:$0xff] %v637_v4  ;;  %v416_v20 = vmul.f32 %v1442_v1, %v378_v0  ;;  %v492_v21 = vmul.f32 %v1450_v5, %v454_v2 }
  0xcd   : > { %v639_v19 = vadd.f32 %v602_v61, %v526_v6  ;;  %v605_v22 = vmul.f32 %v1456_v10, %v567_v3  ;;  %675 = vst [vmem:[%s1492_s30 + $0xe0] sm:$0xff] %v638_v12  ;;  %v528_v26 = vadd.f32 %v491_v14, %v415_v8  ;;  %v417_v27 = vmul.f32 %v1442_v1, %v379_v9 }
  0xce   : > { %v640_v25 = vadd.f32 %v603_v7, %v527_v13  ;;  %v493_v28 = vmul.f32 %v1450_v5, %v455_v11  ;;  %v529_v31 = vadd.f32 %v492_v21, %v416_v20  ;;  %v606_v32 = vmul.f32 %v1456_v10, %v568_v16 }
  0xcf   : > { %676 = vst [vmem:[%s1492_s30 + $0xe8] sm:$0xff] %v639_v19  ;;  %v418_v33 = vmul.f32 %v1442_v1, %v380_v17  ;;  %v494_v34 = vmul.f32 %v1450_v5, %v456_v18  ;;  %v641_v38 = vadd.f32 %v604_v15, %v528_v26  ;;  %v607_v40 = vmul.f32 %v1456_v10, %v569_v23 }
  0xd0   : > { %677 = vst [vmem:[%s1492_s30 + $0xf0] sm:$0xff] %v640_v25  ;;  %v530_v39 = vadd.f32 %v493_v28, %v417_v27  ;;  %v419_v41 = vmul.f32 %v1442_v1, %v381_v24  ;;  %v642_v42 = vadd.f32 %v605_v22, %v529_v31  ;;  %v495_v44 = vmul.f32 %v1450_v5, %v457_v29 }
  0xd1   : > { %v531_v43 = vadd.f32 %v494_v34, %v418_v33  ;;  %v608_v45 = vmul.f32 %v1456_v10, %v570_v30  ;;  %678 = vst [vmem:[%s1492_s30 + $0xf8] sm:$0xff] %v641_v38  ;;  %v420_v47 = vmul.f32 %v1442_v1, %v382_v35  ;;  %v496_v48 = vmul.f32 %v1450_v5, %v458_v36 }
  0xd2   : > { %v643_v46 = vadd.f32 %v606_v32, %v530_v39  ;;  %v609_v49 = vmul.f32 %v1456_v10, %v571_v37  ;;  %679 = vst [vmem:[%s1492_s30 + $0x100] sm:$0xff] %v642_v42  ;;  %v532_v51 = vadd.f32 %v495_v44, %v419_v41 }
  0xd3   : > { %v644_v50 = vadd.f32 %v607_v40, %v531_v43  ;;  %v533_v52 = vadd.f32 %v496_v48, %v420_v47  ;;  %691 = sbr.rel (!%p1269_p9) target bundleno = 247 (0xf7), region = 48 }
  0xd4   : > { %680 = vst [vmem:[%s1492_s30 + $0x108] sm:$0xff] %v643_v46  ;;  %v645_v53 = vadd.f32 %v608_v45, %v532_v51 }
  0xd5   : > { %681 = vst [vmem:[%s1492_s30 + $0x110] sm:$0xff] %v644_v50  ;;  %v646_v54 = vadd.f32 %v609_v49, %v533_v52 }
  0xd6   : > { %682 = vst [vmem:[%s1492_s30 + $0x118] sm:$0xff] %v645_v53 }
  0xd7   : > { %683 = vst [vmem:[%s1492_s30 + $0x120] sm:$0xff] %v646_v54 }
  0xd8   : > { %s1812_s8 = smov (!%p694_p8, %s693_s8), 37 }
  0xd9   : > { %s862_s13 = sshll.u32 %s1812_s8, 3 }
  0xda   : > { %s697_s14 = ssub.s32 296, %s862_s13 }
  0xdb   : > { %s698_s17 = sshll.u32 %s697_s14, 4 }
  0xdc   : > { %699 = vsyncadd %s685_s18, %s698_s17  ;;  %p1721_p4 = scmp.ne.s32.totalorder %s862_s13, 0  ;;  %s872_s29 = smul.u32 296, %s1163_s22 }
  0xdd   : > { %s705_s25 = sshll.u32 %s1492_s30, 4  ;;  %s866_s9 = sshll.u32 %s1812_s8, 7  ;;  %s1731_s25 = int_to_ptr.vmem [resolvable:$true] %s705_s25 }
  0xde   : > { %s703_s12 = scalar_lea.hbm %s1784_s4, %s872_s29  ;;  %s1072_s16 = sshra.s32 %s1731_s25, 4  ;;  %s1073_s16 = int_to_ptr.vmem [resolvable:$true] %s1072_s16 }
  0xdf   : > { %s707_s6 = sshll.u32 %s703_s12, 4  ;;  %s1074_s27 = sshrl.u32 %s866_s9, 4  ;;  %s1733_s6 = int_to_ptr.hbm [resolvable:$true] %s707_s6 }
  0xe0   : > { %s1079_s26 = scalar_lea.vmem %s1073_s16, %s1074_s27  ;;  %s1183_s22 = smov [#allocation10]  }
  0xe1   : > { %p1080_p9 = scmp.ne.s32.totalorder %s1073_s16, %s1079_s26  ;;  %s1083_s24 = scalar_lea.vmem %s1183_s22, 592 }
  0xe2   : > { %p1085_p5 = scmp.lt.s32.totalorder %s1083_s24, %s1079_s26 }
  0xe3   : > { %p1081_p2 = pnand %p1080_p9, %p1721_p4 }
  0xe5   : > { %p1082_p3 = pneg %p1081_p2 }
  0xe7   : > { %p1087_p6 = pnand %p1085_p5, %p1082_p3 }
  0xe9   : > { %1090 = shalt.err (!%p1087_p6)
}
  0xea   : > { %s1091_s30 = sshra.s32 %s1733_s6, 4  ;;  %s1102_s17 = scalar_lea.hbm %s1784_s4, 304  ;;  %s1092_s30 = int_to_ptr.hbm [resolvable:$true] %s1091_s30 }
  0xeb   : > { %s1098_s28 = scalar_lea.hbm %s1092_s30, %s1074_s27  ;;  %p1103_p13 = scmp.lt.s32.totalorder %s1092_s30, %s1784_s4 }
  0xec   : > { %p1099_p7 = scmp.ne.s32.totalorder %s1092_s30, %s1098_s28  ;;  %p1104_p1 = scmp.lt.s32.totalorder %s1102_s17, %s1098_s28 }
  0xee   : > { %p1100_p0 = pnand %p1099_p7, %p1721_p4  ;;  %p1105_p8 = por %p1104_p1, %p1103_p13 }
  0xf0   : > { %p1101_p10 = pneg %p1100_p0 }
  0xf2   : > { %p1106_p9 = pnand %p1105_p8, %p1101_p10 }
  0xf4   : > { %1109 = shalt.err (!%p1106_p9)
}
  0xf5   : > { %s1184_s15 = smov 128   ;;  %s1185_s12 = smov 8  }
  0xf6   : > { %713 = dma.vmem_to_hbm [thread:$0]  (%p1721_p4), %s1731_s25, %s866_s9, %s1733_s6, %s685_s18, %s1184_s15, %s1184_s15, %s1185_s12  }
  0xf7 PF: > { %s722_s16 = sand.u32 1, %s1151_s19   ;;  %p882_p2 = pnand %p843_p12, %p1276_p11 }
  0xf8   : > { %s723_s27 = scalar_lea.sflag [#allocation6], %s722_s16 }
  0xf9   : > { %p883_p3 = pneg %p882_p2 }
  0xfb   : > { %1146 = dma.done.wait (%p883_p3), %s723_s27, 4736  }
  0xfc   : > { %1148 = vsyncadd (%p883_p3), %s723_s27, 4294962560  ;;  %s31_s23 = sadd.s32 1, %s1171_s23   ;;  %s1796_s11 = sld [smem:[#allocation16_spill]] }
  0xfd   : > { %p28_p5 = scmp.ge.s32.totalorder %s31_s23, 4   ;;  %s1797_s18 = sld [smem:[#allocation15_spill]] }
  0xfe   : > { %s1798_s19 = smov %s1155_s20  ;;  %s1799_s20 = smov %s1159_s21 }
  0xff   : > { %s1801_s22 = smov %s1167_s0  ;;  %30 = sbr.rel (!%p28_p5) target bundleno = 14 (0xe), region = 101 }
 0x102   : > { %s1800_s21 = smov %s1796_s11 }
 0x103   : > { %s1802_s0 = smov %s1797_s18 }
 0x104   :  { %729 = vsyncpa [#allocation5], 1 }
 0x105   :  { %731 = vsyncpa [#allocation5 + $0x1], 1 }
 0x106   :  { %732 = vsyncpa [#allocation8], 1 }
 0x107   :  { %734 = vsyncpa [#allocation8 + $0x1], 1 }
 0x108   :  { %735 = vsyncpa [#allocation6], 1 }
 0x109   :  { %737 = vsyncpa [#allocation6 + $0x1], 1 }

</bundles_post_ra>
